<compile_context>
chip_gen: v6e
topology: v6e:2x2x1
jax: 0.10.0
libtpu: 0.0.40
codegen_flags: <defaults>
</compile_context>

<pallas_src>
import functools

import jax
import jax.numpy as jnp
from jax import lax
from jax.experimental import pallas as pl
from jax.experimental.pallas import tpu as pltpu


def _nonlinear_gat_p_kernel(x_ref, w_heads_ref, al_ref, ar_ref, p_ref,
                            w_out_ref, al_out_ref, ar_out_ref, adj_ref,
                            out_ref, *, neg_slope, s_f, nheads, nhid):
    x = x_ref[...]                                # [N, Fin]
    adj = adj_ref[...]                            # [N, N], 1.0 on edges
    edge_mask = adj > 0.0                         # [N, N] bool

    # --- all heads' linear transforms in one wide MXU call -------------------
    feat_all = jnp.dot(x, w_heads_ref[...],
                       preferred_element_type=jnp.float32)   # [N, nheads*nhid]

    # sigmoid(p) * s_f, computed once for all heads.
    p_s = jax.nn.sigmoid(p_ref[...]) * s_f                    # [1, nheads]

    def attention_weights(feat, al, ar):
        # el[s] = <feat[s,:], al>, produced directly as a [1, N] row
        # (no ones-matrix matmul, no transpose).
        el_row = lax.dot_general(al, feat, (((1,), (1,)), ((), ())),
                                 preferred_element_type=jnp.float32)  # [1, N]
        er_col = jnp.sum(feat * ar, axis=1, keepdims=True)            # [N, 1]
        e = el_row + er_col                                           # e[d, s]
        e = jnp.where(e >= 0.0, e, neg_slope * e)                     # leaky relu
        e = jnp.where(edge_mask, e, -1e30)                            # mask non-edges
        e = e - jnp.max(e, axis=1, keepdims=True)
        w_att = jnp.exp(e)                     # exactly 0 off-edge (underflow)
        inv_rowsum = pl.reciprocal(jnp.sum(w_att, axis=1, keepdims=True),
                                   approx=True)                       # [N, 1]
        return w_att, inv_rowsum

    # --- GATConv_P heads ------------------------------------------------------
    head_outputs = []
    for h in range(nheads):                       # nheads is small & static
        feat = feat_all[:, h * nhid:(h + 1) * nhid]                   # [N, H]
        al = al_ref[h:h + 1, :]                                       # [1, H]
        ar = ar_ref[h:h + 1, :]                                       # [1, H]
        w_att, inv = attention_weights(feat, al, ar)

        p_h = p_s[0:1, h:h + 1]                                       # [1, 1]
        mu = jnp.min(feat)                       # global min over this head's feat
        base = feat - mu + 1e-6                                       # > 0
        down_f = jnp.exp(p_h * jnp.log(base))    # base ** p
        top_f = down_f * base                    # base ** (p + 1)

        # one fused aggregation matmul for numerator and denominator
        fused = jnp.concatenate([top_f, down_f], axis=1)              # [N, 2H]
        agg = jnp.dot(w_att, fused, preferred_element_type=jnp.float32)
        top_rst = agg[:, :nhid] * inv
        down_rst = agg[:, nhid:] * inv
        rst = top_rst * pl.reciprocal(down_rst + 1e-6, approx=True) + mu
        head_outputs.append(rst)

    hcat = jnp.concatenate(head_outputs, axis=1)                      # [N, nheads*H]

    # --- output GATConv (concat=False) + ELU + log_softmax -------------------
    feat_o = jnp.dot(hcat, w_out_ref[...],
                     preferred_element_type=jnp.float32)              # [N, C]
    w_att_o, inv_o = attention_weights(feat_o, al_out_ref[...], ar_out_ref[...])
    rst_o = jnp.dot(w_att_o, feat_o, preferred_element_type=jnp.float32) * inv_o

    y = jnp.where(rst_o > 0.0, rst_o, jnp.exp(rst_o) - 1.0)           # ELU (alpha=1)
    m = jnp.max(y, axis=1, keepdims=True)
    lse = m + jnp.log(jnp.sum(jnp.exp(y - m), axis=1, keepdims=True))
    out_ref[...] = y - lse                                            # log_softmax


def nonlinear_gat_p_forward(params, x, adj, p, *, neg_slope, s_f):
    n, nfeat = x.shape
    nheads, nhid = params["attn_l"].shape
    nclass = params["w_out"].shape[1]

    kern = functools.partial(_nonlinear_gat_p_kernel, neg_slope=neg_slope,
                             s_f=s_f, nheads=nheads, nhid=nhid)
    vmem = pl.BlockSpec(memory_space=pltpu.MemorySpace.VMEM)

    # rough cost hint for the XLA scheduler
    flops = int(2 * n * nfeat * nheads * nhid                 # x @ W_heads
                + nheads * (2 * n * n * 2 * nhid + 8 * n * n)  # per-head attn+agg
                + 2 * n * nheads * nhid * nclass               # hcat @ W_out
                + 2 * n * n * nclass + 8 * n * n)              # out attn+agg
    transc = int(nheads * (n * n + 2 * n * nhid) + n * n + 2 * n * nclass)
    bytes_acc = int(4 * (n * n + n * nfeat + n * nclass
                         + nfeat * nheads * nhid + nheads * nhid * nclass))

    return pl.pallas_call(
        kern,
        out_shape=jax.ShapeDtypeStruct((n, nclass), jnp.float32),
        in_specs=[vmem] * 9,
        out_specs=vmem,
        cost_estimate=pl.CostEstimate(flops=flops, transcendentals=transc,
                                      bytes_accessed=bytes_acc),
    )(x, params["w_heads"], params["attn_l"], params["attn_r"], p,
      params["w_out"], params["attn_l_out"], params["attn_r_out"], adj)


def xavier_normal(key, shape, fan_in, fan_out, gain):
    std = gain * (2.0 / (fan_in + fan_out)) ** 0.5
    return std * jax.random.normal(key, shape, dtype=jnp.float32)


if __name__ == "__main__":
    # Small shapes consistent with the module.
    N = 32          # number of nodes
    NFEAT = 16
    NHID = 8
    NCLASS = 4
    NHEADS = 2
    ALPHA = 0.2     # leaky-relu negative slope
    S_F = 1.0
    GAIN = 2.0 ** 0.5  # calculate_gain('relu')

    key = jax.random.PRNGKey(0)
    keys = jax.random.split(key, 5 + 3 * NHEADS + 3)

    # Node features.
    x = jax.random.normal(keys[0], (N, NFEAT), dtype=jnp.float32)

    # Graph: ring + self loops (every node has in-degree >= 1). adj[dst, src].
    adj = jnp.zeros((N, N), dtype=jnp.float32)
    idx = jnp.arange(N)
    adj = adj.at[idx, idx].set(1.0)                # self loops
    adj = adj.at[idx, (idx + 1) % N].set(1.0)      # src = i+1 -> dst = i
    adj = adj.at[idx, (idx - 1) % N].set(1.0)      # src = i-1 -> dst = i

    # p: [1, nheads] (p[0, i] is the per-head scalar fed to sigmoid).
    p = jax.random.normal(keys[1], (1, NHEADS), dtype=jnp.float32)

    # Parameters (deterministic xavier-normal init, mirrors reset_parameters).
    # Per-head fc weights are stacked along the output axis so the kernel can
    # do a single x @ W_heads matmul; attn_l / attn_r stacked as [nheads, H].
    w_list, al_list, ar_list = [], [], []
    for i in range(NHEADS):
        kw, kl, kr = keys[2 + 3 * i], keys[3 + 3 * i], keys[4 + 3 * i]
        # torch Linear weight is (out, in); stored transposed for x @ W.
        w_list.append(xavier_normal(kw, (NFEAT, NHID), NFEAT, NHID, GAIN))
        al_list.append(xavier_normal(kl, (1, NHID), NHID, 1, GAIN))
        ar_list.append(xavier_normal(kr, (1, NHID), NHID, 1, GAIN))

    ko_w = keys[2 + 3 * NHEADS]
    ko_l = keys[3 + 3 * NHEADS]
    ko_r = keys[4 + 3 * NHEADS]
    params = {
        "w_heads": jnp.concatenate(w_list, axis=1),        # [NFEAT, NHEADS*NHID]
        "attn_l": jnp.concatenate(al_list, axis=0),        # [NHEADS, NHID]
        "attn_r": jnp.concatenate(ar_list, axis=0),        # [NHEADS, NHID]
        "w_out": xavier_normal(ko_w, (NHID * NHEADS, NCLASS),
                               NHID * NHEADS, NCLASS, GAIN),
        "attn_l_out": xavier_normal(ko_l, (1, NCLASS), NCLASS, 1, GAIN),
        "attn_r_out": xavier_normal(ko_r, (1, NCLASS), NCLASS, 1, GAIN),
    }
    # TODO(synk): dropout layers (feat_drop / attn_drop / F.dropout) are identity
    # here (inference-mode semantics); GATConv bias is zero-initialized so omitted.

    out = nonlinear_gat_p_forward(params, x, adj, p, neg_slope=ALPHA, s_f=S_F)
    out = jax.block_until_ready(out)
    assert out.shape == (N, NCLASS)
    assert bool(jnp.all(jnp.isfinite(out)))
    print("KERNEL_OK")
</pallas_src>

<mosaic_0001>
module attributes {stable_mosaic.version = 11 : i64} {
  func.func @_nonlinear_gat_p_kernel(%arg0: memref<32x16xf32, #tpu.memory_space<vmem>>, %arg1: memref<16x16xf32, #tpu.memory_space<vmem>>, %arg2: memref<2x8xf32, #tpu.memory_space<vmem>>, %arg3: memref<2x8xf32, #tpu.memory_space<vmem>>, %arg4: memref<1x2xf32, #tpu.memory_space<vmem>>, %arg5: memref<16x4xf32, #tpu.memory_space<vmem>>, %arg6: memref<1x4xf32, #tpu.memory_space<vmem>>, %arg7: memref<1x4xf32, #tpu.memory_space<vmem>>, %arg8: memref<32x32xf32, #tpu.memory_space<vmem>>, %arg9: memref<32x4xf32, #tpu.memory_space<vmem>>) attributes {dimension_semantics = [], scalar_prefetch = 0 : i64, scratch_operands = 0 : i64, tpu.core_type = #tpu.core_type<tc>} {
    %c0 = arith.constant 0 : index
    %c0_0 = arith.constant 0 : index
    %0 = vector.load %arg0[%c0, %c0_0] : memref<32x16xf32, #tpu.memory_space<vmem>>, vector<32x16xf32>
    %c0_1 = arith.constant 0 : index
    %c0_2 = arith.constant 0 : index
    %1 = vector.load %arg8[%c0_1, %c0_2] : memref<32x32xf32, #tpu.memory_space<vmem>>, vector<32x32xf32>
    %cst = arith.constant 0.000000e+00 : f32
    %2 = vector.broadcast %cst : f32 to vector<32x32xf32>
    %3 = arith.cmpf ogt, %1, %2 : vector<32x32xf32>
    %c0_3 = arith.constant 0 : index
    %c0_4 = arith.constant 0 : index
    %4 = vector.load %arg1[%c0_3, %c0_4] : memref<16x16xf32, #tpu.memory_space<vmem>>, vector<16x16xf32>
    %cst_5 = arith.constant dense<0.000000e+00> : vector<32x16xf32>
    %5 = tpu.matmul %0, %4, %cst_5 {dimension_numbers = #tpu.dot_dimension_numbers<[1], [0], [0], [1], [0, 0, 1, 1], [], []>} : vector<32x16xf32>, vector<16x16xf32>, vector<32x16xf32> -> vector<32x16xf32>
    %c0_6 = arith.constant 0 : index
    %c0_7 = arith.constant 0 : index
    %6 = vector.load %arg4[%c0_6, %c0_7] : memref<1x2xf32, #tpu.memory_space<vmem>>, vector<1x2xf32>
    %7 = arith.negf %6 : vector<1x2xf32>
    %8 = math.exp %7 : vector<1x2xf32>
    %cst_8 = arith.constant 1.000000e+00 : f32
    %9 = vector.broadcast %cst_8 : f32 to vector<1x2xf32>
    %10 = arith.addf %9, %8 : vector<1x2xf32>
    %11 = arith.divf %9, %10 : vector<1x2xf32>
    %cst_9 = arith.constant 1.000000e+00 : f32
    %12 = vector.broadcast %cst_9 : f32 to vector<1x2xf32>
    %13 = arith.mulf %11, %12 : vector<1x2xf32>
    %14 = vector.extract_strided_slice %5 {offsets = [0, 0], sizes = [32, 8], strides = [1, 1]} : vector<32x16xf32> to vector<32x8xf32>
    %c0_10 = arith.constant 0 : index
    %c0_11 = arith.constant 0 : index
    %15 = vector.load %arg2[%c0_10, %c0_11] : memref<2x8xf32, #tpu.memory_space<vmem>>, vector<1x8xf32>
    %c0_12 = arith.constant 0 : index
    %c0_13 = arith.constant 0 : index
    %16 = vector.load %arg3[%c0_12, %c0_13] : memref<2x8xf32, #tpu.memory_space<vmem>>, vector<1x8xf32>
    %cst_14 = arith.constant dense<0.000000e+00> : vector<1x32xf32>
    %17 = tpu.matmul %15, %14, %cst_14 {dimension_numbers = #tpu.dot_dimension_numbers<[1], [1], [0], [0], [0, 0, 1, 0], [], []>} : vector<1x8xf32>, vector<32x8xf32>, vector<1x32xf32> -> vector<1x32xf32>
    %18 = vector.broadcast %16 : vector<1x8xf32> to vector<32x8xf32>
    %19 = arith.mulf %14, %18 : vector<32x8xf32>
    %cst_15 = arith.constant dense<0.000000e+00> : vector<32xf32>
    %20 = vector.multi_reduction <add>, %19, %cst_15 [1] : vector<32x8xf32> to vector<32xf32>
    %21 = vector.shape_cast %20 : vector<32xf32> to vector<32x1xf32>
    %22 = vector.broadcast %17 : vector<1x32xf32> to vector<32x32xf32>
    %23 = vector.broadcast %21 : vector<32x1xf32> to vector<32x32xf32>
    %24 = arith.addf %22, %23 : vector<32x32xf32>
    %cst_16 = arith.constant 0.000000e+00 : f32
    %25 = vector.broadcast %cst_16 : f32 to vector<32x32xf32>
    %26 = arith.cmpf oge, %24, %25 : vector<32x32xf32>
    %cst_17 = arith.constant 2.000000e-01 : f32
    %27 = vector.broadcast %cst_17 : f32 to vector<32x32xf32>
    %28 = arith.mulf %27, %24 : vector<32x32xf32>
    %29 = arith.select %26, %24, %28 : vector<32x32xi1>, vector<32x32xf32>
    %cst_18 = arith.constant -1.000000e+30 : f32
    %30 = vector.broadcast %cst_18 : f32 to vector<32x32xf32>
    %31 = arith.select %3, %29, %30 : vector<32x32xi1>, vector<32x32xf32>
    %cst_19 = arith.constant dense<0xFF800000> : vector<32xf32>
    %32 = vector.multi_reduction <maximumf>, %31, %cst_19 [1] : vector<32x32xf32> to vector<32xf32>
    %33 = vector.shape_cast %32 : vector<32xf32> to vector<32x1xf32>
    %34 = vector.broadcast %33 : vector<32x1xf32> to vector<32x32xf32>
    %35 = arith.subf %31, %34 : vector<32x32xf32>
    %36 = math.exp %35 : vector<32x32xf32>
    %cst_20 = arith.constant dense<0.000000e+00> : vector<32xf32>
    %37 = vector.multi_reduction <add>, %36, %cst_20 [1] : vector<32x32xf32> to vector<32xf32>
    %38 = vector.shape_cast %37 : vector<32xf32> to vector<32x1xf32>
    %39 = tpu.reciprocal %38 {approx = true} : vector<32x1xf32> -> vector<32x1xf32>
    %40 = vector.extract_strided_slice %13 {offsets = [0, 0], sizes = [1, 1], strides = [1, 1]} : vector<1x2xf32> to vector<1x1xf32>
    %41 = vector.shape_cast %14 : vector<32x8xf32> to vector<1x32x8xf32>
    %cst_21 = arith.constant dense<0x7F800000> : vector<1xf32>
    %42 = vector.multi_reduction <minimumf>, %41, %cst_21 [1, 2] : vector<1x32x8xf32> to vector<1xf32>
    %43 = vector.shape_cast %42 : vector<1xf32> to vector<1x1x1xf32>
    %44 = vector.extract %43[0, 0, 0] : f32 from vector<1x1x1xf32>
    %45 = vector.broadcast %44 : f32 to vector<32x8xf32>
    %46 = arith.subf %14, %45 : vector<32x8xf32>
    %cst_22 = arith.constant 9.99999997E-7 : f32
    %47 = vector.broadcast %cst_22 : f32 to vector<32x8xf32>
    %48 = arith.addf %46, %47 : vector<32x8xf32>
    %49 = math.log %48 : vector<32x8xf32>
    %50 = vector.broadcast %40 : vector<1x1xf32> to vector<32x8xf32>
    %51 = arith.mulf %50, %49 : vector<32x8xf32>
    %52 = math.exp %51 : vector<32x8xf32>
    %53 = arith.mulf %52, %48 : vector<32x8xf32>
    %54 = tpu.concatenate %53, %52 in 1 : vector<32x8xf32>, vector<32x8xf32> -> vector<32x16xf32>
    %cst_23 = arith.constant dense<0.000000e+00> : vector<32x16xf32>
    %55 = tpu.matmul %36, %54, %cst_23 {dimension_numbers = #tpu.dot_dimension_numbers<[1], [0], [0], [1], [0, 0, 1, 1], [], []>} : vector<32x32xf32>, vector<32x16xf32>, vector<32x16xf32> -> vector<32x16xf32>
    %56 = vector.extract_strided_slice %55 {offsets = [0, 0], sizes = [32, 8], strides = [1, 1]} : vector<32x16xf32> to vector<32x8xf32>
    %57 = vector.broadcast %39 : vector<32x1xf32> to vector<32x8xf32>
    %58 = arith.mulf %56, %57 : vector<32x8xf32>
    %59 = vector.extract_strided_slice %55 {offsets = [0, 8], sizes = [32, 8], strides = [1, 1]} : vector<32x16xf32> to vector<32x8xf32>
    %60 = vector.broadcast %39 : vector<32x1xf32> to vector<32x8xf32>
    %61 = arith.mulf %59, %60 : vector<32x8xf32>
    %cst_24 = arith.constant 9.99999997E-7 : f32
    %62 = vector.broadcast %cst_24 : f32 to vector<32x8xf32>
    %63 = arith.addf %61, %62 : vector<32x8xf32>
    %64 = tpu.reciprocal %63 {approx = true} : vector<32x8xf32> -> vector<32x8xf32>
    %65 = arith.mulf %58, %64 : vector<32x8xf32>
    %66 = vector.broadcast %44 : f32 to vector<32x8xf32>
    %67 = arith.addf %65, %66 : vector<32x8xf32>
    %68 = vector.extract_strided_slice %5 {offsets = [0, 8], sizes = [32, 8], strides = [1, 1]} : vector<32x16xf32> to vector<32x8xf32>
    %c1 = arith.constant 1 : index
    %c0_25 = arith.constant 0 : index
    %69 = vector.load %arg2[%c1, %c0_25] : memref<2x8xf32, #tpu.memory_space<vmem>>, vector<1x8xf32>
    %c1_26 = arith.constant 1 : index
    %c0_27 = arith.constant 0 : index
    %70 = vector.load %arg3[%c1_26, %c0_27] : memref<2x8xf32, #tpu.memory_space<vmem>>, vector<1x8xf32>
    %cst_28 = arith.constant dense<0.000000e+00> : vector<1x32xf32>
    %71 = tpu.matmul %69, %68, %cst_28 {dimension_numbers = #tpu.dot_dimension_numbers<[1], [1], [0], [0], [0, 0, 1, 0], [], []>} : vector<1x8xf32>, vector<32x8xf32>, vector<1x32xf32> -> vector<1x32xf32>
    %72 = vector.broadcast %70 : vector<1x8xf32> to vector<32x8xf32>
    %73 = arith.mulf %68, %72 : vector<32x8xf32>
    %cst_29 = arith.constant dense<0.000000e+00> : vector<32xf32>
    %74 = vector.multi_reduction <add>, %73, %cst_29 [1] : vector<32x8xf32> to vector<32xf32>
    %75 = vector.shape_cast %74 : vector<32xf32> to vector<32x1xf32>
    %76 = vector.broadcast %71 : vector<1x32xf32> to vector<32x32xf32>
    %77 = vector.broadcast %75 : vector<32x1xf32> to vector<32x32xf32>
    %78 = arith.addf %76, %77 : vector<32x32xf32>
    %cst_30 = arith.constant 0.000000e+00 : f32
    %79 = vector.broadcast %cst_30 : f32 to vector<32x32xf32>
    %80 = arith.cmpf oge, %78, %79 : vector<32x32xf32>
    %cst_31 = arith.constant 2.000000e-01 : f32
    %81 = vector.broadcast %cst_31 : f32 to vector<32x32xf32>
    %82 = arith.mulf %81, %78 : vector<32x32xf32>
    %83 = arith.select %80, %78, %82 : vector<32x32xi1>, vector<32x32xf32>
    %cst_32 = arith.constant -1.000000e+30 : f32
    %84 = vector.broadcast %cst_32 : f32 to vector<32x32xf32>
    %85 = arith.select %3, %83, %84 : vector<32x32xi1>, vector<32x32xf32>
    %cst_33 = arith.constant dense<0xFF800000> : vector<32xf32>
    %86 = vector.multi_reduction <maximumf>, %85, %cst_33 [1] : vector<32x32xf32> to vector<32xf32>
    %87 = vector.shape_cast %86 : vector<32xf32> to vector<32x1xf32>
    %88 = vector.broadcast %87 : vector<32x1xf32> to vector<32x32xf32>
    %89 = arith.subf %85, %88 : vector<32x32xf32>
    %90 = math.exp %89 : vector<32x32xf32>
    %cst_34 = arith.constant dense<0.000000e+00> : vector<32xf32>
    %91 = vector.multi_reduction <add>, %90, %cst_34 [1] : vector<32x32xf32> to vector<32xf32>
    %92 = vector.shape_cast %91 : vector<32xf32> to vector<32x1xf32>
    %93 = tpu.reciprocal %92 {approx = true} : vector<32x1xf32> -> vector<32x1xf32>
    %94 = vector.extract_strided_slice %13 {offsets = [0, 1], sizes = [1, 1], strides = [1, 1]} : vector<1x2xf32> to vector<1x1xf32>
    %95 = vector.shape_cast %68 : vector<32x8xf32> to vector<1x32x8xf32>
    %cst_35 = arith.constant dense<0x7F800000> : vector<1xf32>
    %96 = vector.multi_reduction <minimumf>, %95, %cst_35 [1, 2] : vector<1x32x8xf32> to vector<1xf32>
    %97 = vector.shape_cast %96 : vector<1xf32> to vector<1x1x1xf32>
    %98 = vector.extract %97[0, 0, 0] : f32 from vector<1x1x1xf32>
    %99 = vector.broadcast %98 : f32 to vector<32x8xf32>
    %100 = arith.subf %68, %99 : vector<32x8xf32>
    %cst_36 = arith.constant 9.99999997E-7 : f32
    %101 = vector.broadcast %cst_36 : f32 to vector<32x8xf32>
    %102 = arith.addf %100, %101 : vector<32x8xf32>
    %103 = math.log %102 : vector<32x8xf32>
    %104 = vector.broadcast %94 : vector<1x1xf32> to vector<32x8xf32>
    %105 = arith.mulf %104, %103 : vector<32x8xf32>
    %106 = math.exp %105 : vector<32x8xf32>
    %107 = arith.mulf %106, %102 : vector<32x8xf32>
    %108 = tpu.concatenate %107, %106 in 1 : vector<32x8xf32>, vector<32x8xf32> -> vector<32x16xf32>
    %cst_37 = arith.constant dense<0.000000e+00> : vector<32x16xf32>
    %109 = tpu.matmul %90, %108, %cst_37 {dimension_numbers = #tpu.dot_dimension_numbers<[1], [0], [0], [1], [0, 0, 1, 1], [], []>} : vector<32x32xf32>, vector<32x16xf32>, vector<32x16xf32> -> vector<32x16xf32>
    %110 = vector.extract_strided_slice %109 {offsets = [0, 0], sizes = [32, 8], strides = [1, 1]} : vector<32x16xf32> to vector<32x8xf32>
    %111 = vector.broadcast %93 : vector<32x1xf32> to vector<32x8xf32>
    %112 = arith.mulf %110, %111 : vector<32x8xf32>
    %113 = vector.extract_strided_slice %109 {offsets = [0, 8], sizes = [32, 8], strides = [1, 1]} : vector<32x16xf32> to vector<32x8xf32>
    %114 = vector.broadcast %93 : vector<32x1xf32> to vector<32x8xf32>
    %115 = arith.mulf %113, %114 : vector<32x8xf32>
    %cst_38 = arith.constant 9.99999997E-7 : f32
    %116 = vector.broadcast %cst_38 : f32 to vector<32x8xf32>
    %117 = arith.addf %115, %116 : vector<32x8xf32>
    %118 = tpu.reciprocal %117 {approx = true} : vector<32x8xf32> -> vector<32x8xf32>
    %119 = arith.mulf %112, %118 : vector<32x8xf32>
    %120 = vector.broadcast %98 : f32 to vector<32x8xf32>
    %121 = arith.addf %119, %120 : vector<32x8xf32>
    %122 = tpu.concatenate %67, %121 in 1 : vector<32x8xf32>, vector<32x8xf32> -> vector<32x16xf32>
    %c0_39 = arith.constant 0 : index
    %c0_40 = arith.constant 0 : index
    %123 = vector.load %arg5[%c0_39, %c0_40] : memref<16x4xf32, #tpu.memory_space<vmem>>, vector<16x4xf32>
    %cst_41 = arith.constant dense<0.000000e+00> : vector<32x4xf32>
    %124 = tpu.matmul %122, %123, %cst_41 {dimension_numbers = #tpu.dot_dimension_numbers<[1], [0], [0], [1], [0, 0, 1, 1], [], []>} : vector<32x16xf32>, vector<16x4xf32>, vector<32x4xf32> -> vector<32x4xf32>
    %c0_42 = arith.constant 0 : index
    %c0_43 = arith.constant 0 : index
    %125 = vector.load %arg6[%c0_42, %c0_43] : memref<1x4xf32, #tpu.memory_space<vmem>>, vector<1x4xf32>
    %c0_44 = arith.constant 0 : index
    %c0_45 = arith.constant 0 : index
    %126 = vector.load %arg7[%c0_44, %c0_45] : memref<1x4xf32, #tpu.memory_space<vmem>>, vector<1x4xf32>
    %cst_46 = arith.constant dense<0.000000e+00> : vector<1x32xf32>
    %127 = tpu.matmul %125, %124, %cst_46 {dimension_numbers = #tpu.dot_dimension_numbers<[1], [1], [0], [0], [0, 0, 1, 0], [], []>} : vector<1x4xf32>, vector<32x4xf32>, vector<1x32xf32> -> vector<1x32xf32>
    %128 = vector.broadcast %126 : vector<1x4xf32> to vector<32x4xf32>
    %129 = arith.mulf %124, %128 : vector<32x4xf32>
    %cst_47 = arith.constant dense<0.000000e+00> : vector<32xf32>
    %130 = vector.multi_reduction <add>, %129, %cst_47 [1] : vector<32x4xf32> to vector<32xf32>
    %131 = vector.shape_cast %130 : vector<32xf32> to vector<32x1xf32>
    %132 = vector.broadcast %127 : vector<1x32xf32> to vector<32x32xf32>
    %133 = vector.broadcast %131 : vector<32x1xf32> to vector<32x32xf32>
    %134 = arith.addf %132, %133 : vector<32x32xf32>
    %cst_48 = arith.constant 0.000000e+00 : f32
    %135 = vector.broadcast %cst_48 : f32 to vector<32x32xf32>
    %136 = arith.cmpf oge, %134, %135 : vector<32x32xf32>
    %cst_49 = arith.constant 2.000000e-01 : f32
    %137 = vector.broadcast %cst_49 : f32 to vector<32x32xf32>
    %138 = arith.mulf %137, %134 : vector<32x32xf32>
    %139 = arith.select %136, %134, %138 : vector<32x32xi1>, vector<32x32xf32>
    %cst_50 = arith.constant -1.000000e+30 : f32
    %140 = vector.broadcast %cst_50 : f32 to vector<32x32xf32>
    %141 = arith.select %3, %139, %140 : vector<32x32xi1>, vector<32x32xf32>
    %cst_51 = arith.constant dense<0xFF800000> : vector<32xf32>
    %142 = vector.multi_reduction <maximumf>, %141, %cst_51 [1] : vector<32x32xf32> to vector<32xf32>
    %143 = vector.shape_cast %142 : vector<32xf32> to vector<32x1xf32>
    %144 = vector.broadcast %143 : vector<32x1xf32> to vector<32x32xf32>
    %145 = arith.subf %141, %144 : vector<32x32xf32>
    %146 = math.exp %145 : vector<32x32xf32>
    %cst_52 = arith.constant dense<0.000000e+00> : vector<32xf32>
    %147 = vector.multi_reduction <add>, %146, %cst_52 [1] : vector<32x32xf32> to vector<32xf32>
    %148 = vector.shape_cast %147 : vector<32xf32> to vector<32x1xf32>
    %149 = tpu.reciprocal %148 {approx = true} : vector<32x1xf32> -> vector<32x1xf32>
    %cst_53 = arith.constant dense<0.000000e+00> : vector<32x4xf32>
    %150 = tpu.matmul %146, %124, %cst_53 {dimension_numbers = #tpu.dot_dimension_numbers<[1], [0], [0], [1], [0, 0, 1, 1], [], []>} : vector<32x32xf32>, vector<32x4xf32>, vector<32x4xf32> -> vector<32x4xf32>
    %151 = vector.broadcast %149 : vector<32x1xf32> to vector<32x4xf32>
    %152 = arith.mulf %150, %151 : vector<32x4xf32>
    %cst_54 = arith.constant 0.000000e+00 : f32
    %153 = vector.broadcast %cst_54 : f32 to vector<32x4xf32>
    %154 = arith.cmpf ogt, %152, %153 : vector<32x4xf32>
    %155 = math.exp %152 : vector<32x4xf32>
    %cst_55 = arith.constant 1.000000e+00 : f32
    %156 = vector.broadcast %cst_55 : f32 to vector<32x4xf32>
    %157 = arith.subf %155, %156 : vector<32x4xf32>
    %158 = arith.select %154, %152, %157 : vector<32x4xi1>, vector<32x4xf32>
    %cst_56 = arith.constant dense<0xFF800000> : vector<32xf32>
    %159 = vector.multi_reduction <maximumf>, %158, %cst_56 [1] : vector<32x4xf32> to vector<32xf32>
    %160 = vector.shape_cast %159 : vector<32xf32> to vector<32x1xf32>
    %161 = vector.broadcast %160 : vector<32x1xf32> to vector<32x4xf32>
    %162 = arith.subf %158, %161 : vector<32x4xf32>
    %163 = math.exp %162 : vector<32x4xf32>
    %cst_57 = arith.constant dense<0.000000e+00> : vector<32xf32>
    %164 = vector.multi_reduction <add>, %163, %cst_57 [1] : vector<32x4xf32> to vector<32xf32>
    %165 = vector.shape_cast %164 : vector<32xf32> to vector<32x1xf32>
    %166 = math.log %165 : vector<32x1xf32>
    %167 = arith.addf %160, %166 : vector<32x1xf32>
    %168 = vector.broadcast %167 : vector<32x1xf32> to vector<32x4xf32>
    %169 = arith.subf %158, %168 : vector<32x4xf32>
    %c0_58 = arith.constant 0 : index
    %c0_59 = arith.constant 0 : index
    %170 = vector.load %arg9[%c0_58, %c0_59] : memref<32x4xf32, #tpu.memory_space<vmem>>, vector<32x4xf32>
    tpu.vector_store %arg9[%c0_58, %c0_59], %169 {strides = array<i32>} : memref<32x4xf32, #tpu.memory_space<vmem>>, vector<32x4xf32>,
    return
  }
}

</mosaic_0001>

<bundles_post_ra>
// kernel: tpu_custom_call.1
= control target key start
LH: loop header
LB: loop body
LE: loop exit
PB: predicated region body
PF: predicated region fallthrough
CT: control target
= control target key end

     0   :  { %vm46_vm0 = vcmask 130048   ;;  %v1736_v6 = vmov 0.0   ;;  %vm1737_vm1 = vmmov 0   ;;  %v1738_v7 = vmov 0   ;;  %s1740_s14 = smov 120   ;;  %s2200_s1 = inlined_call_operand.vmem [shape: f32[16,16], index: 1, kind: input, shape index: {}]   ;;  %s2201_s0 = inlined_call_operand.vmem [shape: f32[32,16], index: 0, kind: input, shape index: {}]   ;;  %s2202_s4 = inlined_call_operand.vmem [shape: f32[1,2], index: 4, kind: input, shape index: {}]   ;;  %s2203_s3 = inlined_call_operand.vmem [shape: f32[2,8], index: 3, kind: input, shape index: {}]   ;;  %s2204_s2 = inlined_call_operand.vmem [shape: f32[2,8], index: 2, kind: input, shape index: {}]   ;;  %s2205_s8 = inlined_call_operand.vmem [shape: f32[32,32], index: 8, kind: input, shape index: {}]   ;;  %s2206_s5 = inlined_call_operand.vmem [shape: f32[16,4], index: 5, kind: input, shape index: {}]   ;;  %s2207_s7 = inlined_call_operand.vmem [shape: f32[1,4], index: 7, kind: input, shape index: {}]   ;;  %s2208_s6 = inlined_call_operand.vmem [shape: f32[1,4], index: 6, kind: input, shape index: {}]   ;;  %s2209_s9 = inlined_call_operand.vmem [shape: f32[32,4], index: 9, kind: output, shape index: {}]  }
   0x1   :  { %v45_v0 = vld [vmem:[%s2200_s1 + $0x8] sm:$0xff]  ;;  %v44_v1 = vld [vmem:[%s2200_s1] sm:$0xff]  ;;  %v34_v4 = vld [vmem:[%s2201_s0 + $0x10] sm:$0xff]  ;;  %1515 = vmatprep.subr.mxu1 %v1736_v6  ;;  %1523 = vmatprep.mubr.msk.f32.mxu1 %vm1737_vm1, %v1736_v6  ;;  %vm153_vm2 = vcmask 64512   ;;  %v259_v29 = vlaneseq  ;;  %vm283_vm6 = vcmask 261120   ;;  %vm730_vm12 = vcmask 130112  }
   0x2   :  { %v32_v2 = vld [vmem:[%s2201_s0] sm:$0xff]  ;;  %1505 = vmatprep.subr.mxu0 %v45_v0  ;;  %v33_v3 = vld [vmem:[%s2201_s0 + $0x8] sm:$0xff]  ;;  %v35_v5 = vld [vmem:[%s2201_s0 + $0x18] sm:$0xff]  ;;  %1610 = vset.pattern.permute.xlu1 %v1738_v7 }
   0x3   :  { %1509 = vmatprep.mubr.msk.f32.mxu0 %vm46_vm0, %v32_v2  ;;  %1506 = vmatpush3.msra.mxu0 %v45_v0  ;;  %v144_v8 = vld [vmem:[%s2202_s4] sm:$0x1]  ;;  %v260_v32 = vshrl.u32 %v259_v29, 7  ;;  %v1888_v58 = vld [vmem:[%s2205_s8 + $0x8] sm:$0xff] }
   0x4   :  { %1507 = vmatprep.subr.mxu0 %v44_v1  ;;  %v1415_v9 = vmul.f32 -1.442695, %v144_v8  ;;  %v1421_v10 = vld [vmem:[%s2203_s3] ss:$0 sm:$0xff]  ;;  %vm41_vm7 = vcmp.gt.f32.partialorder %v1888_v58, 0.0 }
   0x5   :  { %1508 = vmatpush3.msra.mxu0 %v44_v1  ;;  %v151_v33 = vld [vmem:[%s2204_s2] sm:$0x1]  ;;  %v1861_v36 = vsub.s32 0, %v260_v32 }
   0x6   :  { %1510 = vmatmul.mubr.msk.f32.vlgmr.msra.gmra.mxu0 %vm46_vm0, %v33_v3  ;;  %1612 = vpow2.f32 %v1415_v9  ;;  %v1871_v47 = vld [vmem:[%s2205_s8] sm:$0xff] }
   0x7   :  { %1512 = vmatprep.mubr.msk.f32.mxu0 %vm46_vm0, %v34_v4  ;;  %vm40_vm3 = vcmp.gt.f32.partialorder %v1871_v47, 0.0 }
   0xa   :  { %1513 = vmatmul.mubr.msk.f32.gmra.mxu0 %vm46_vm0, %v35_v5 }
  0x13   :  { %v1613_v11 = vpop.eup %1612 }
  0x14   :  { %v148_v15 = vadd.f32 1.0, %v1613_v11 }
  0x16   :  { %1614 = vrcp.f32 %v148_v15 }
  0x23   :  { %v1615_v34 = vpop.eup %1614 }
  0x24   :  { %v1865_v37 = vrot.slane %v1615_v34, %v1861_v36 }
  0xc6   :  { %v1823_v12 = vpop.f32.mrf.mxu0 }
  0xc7   :  { %v244_v13 = vmul.f32 %v1823_v12, %v1421_v10  ;;  %v325_v21 = vsel %vm153_vm2, %v1823_v12, inf }
  0xc8   :  { %v1826_v14 = vpop.f32.mrf.mxu0 }
  0xc9   :  { %v250_v16 = vsel %vm153_vm2, %v244_v13, 0.0  ;;  %v324_v18 = vsel %vm153_vm2, %v1826_v14, inf  ;;  %v243_v28 = vmul.f32 %v1421_v10, %v1826_v14 }
  0xca   :  { %251 = vadd.xlane.f32.xlu1 %v250_v16  ;;  %v1829_v17 = vpop.f32.mrf.mxu0  ;;  %v328_v24 = vmin.f32 %v324_v18, %v325_v21  ;;  %v1922_v18 = vld [vmem:[%s2205_s8 + $0x18] sm:$0xff] }
  0xcb   :  { %1516 = vmatpush3.xpose.msk.msra.mxu1 %vm153_vm2, %v1829_v17  ;;  %v327_v23 = vsel %vm153_vm2, %v1829_v17, inf  ;;  %v247_v30 = vsel %vm153_vm2, %v243_v28, 0.0  ;;  %v246_v31 = vmul.f32 %v1829_v17, %v1421_v10  ;;  %vm43_vm11 = vcmp.gt.f32.partialorder %v1922_v18, 0.0 }
  0xcc   :  { %v1835_v19 = vpop.f32.mrf.mxu0  ;;  %1517 = vmatprep.subr.mxu1 %v1736_v6 }
  0xcd   :  { %v245_v20 = vmul.f32 %v1421_v10, %v1835_v19  ;;  %v326_v22 = vsel %vm153_vm2, %v1835_v19, inf  ;;  %v256_v35 = vsel %vm153_vm2, %v246_v31, 0.0  ;;  %v1908_v10 = vld [vmem:[%s2205_s8 + $0x10] sm:$0xff]  ;;  %s1739_s8 = smov 8  }
  0xce   :  { %v329_v25 = vmin.f32 %v326_v22, %v327_v23  ;;  %vm42_vm9 = vcmp.gt.f32.partialorder %v1908_v10, 0.0 }
  0xcf   :  { %1518 = vmatpush3.xpose.msk.msra.mxu1 %vm153_vm2, %v1835_v19  ;;  %v253_v26 = vsel %vm153_vm2, %v245_v20, 0.0 }
  0xd0   :  { %254 = vadd.xlane.f32.xlu1 %v253_v26  ;;  %v330_v27 = vmin.f32 %v328_v24, %v329_v25  ;;  %1519 = vmatprep.subr.mxu1 %v1736_v6 }
  0xd2   :  { %331 = vmin.xlane.f32.xlu0 %v330_v27 }
  0xd3   :  { %1520 = vmatpush3.xpose.msk.msra.mxu1 %vm153_vm2, %v1823_v12 }
  0xd4   :  { %1521 = vmatprep.subr.mxu1 %v1736_v6 }
  0xd6   :  { %248 = vadd.xlane.f32.xlu0 %v247_v30 }
  0xd7   :  { %1522 = vmatpush3.xpose.msk.msra.mxu1 %vm153_vm2, %v1826_v14 }
  0xda   :  { %257 = vadd.xlane.f32.xlu0 %v256_v35  ;;  %1524 = vmatmul.mubr.msk.f32.vlgmr.msra.gmra.mxu1 %vm153_vm2, %v151_v33 }
  0xe1   :  { %363 = vperm.xlu1 %1610, %v1865_v37  }
 0x153   :  { %v252_v45 = vpop.xlane.xlu1 %251 }
 0x159   :  { %v255_v54 = vpop.xlane.xlu1 %254 }
 0x15b   :  { %v332_v38 = vpop.xlane.xlu0 %331 }
 0x15c   :  { %v333_v39 = vrot.slane %v332_v38, 4 }
 0x15d   :  { %v364_v26 = vpop.permute.xlu1 %363 }
 0x15e   :  { %v334_v40 = vmin.f32 %v332_v38, %v333_v39 }
 0x15f   :  { %v249_v46 = vpop.xlane.xlu0 %248 }
 0x160   :  { %v335_v41 = vrot.slane %v334_v40, 2 }
 0x162   :  { %v336_v42 = vmin.f32 %v334_v40, %v335_v41 }
 0x163   :  { %v258_v1 = vpop.xlane.xlu0 %257 }
 0x164   :  { %v337_v43 = vrot.slane %v336_v42, 1 }
 0x166   :  { %v338_v44 = vmin.f32 %v336_v42, %v337_v43 }
 0x168   :  { %1600 = vpush %v338_v44 }
 0x199   :  { %s1601_s24 = spop %1600 }
 0x19a   :  { %v1873_v48 = vstv %s1601_s24  ;;  %v235_v49 = vpop.f32.mrf.mxu1 }
 0x19b   :  { %v262_v50 = vrot.slane %v235_v49, %v1861_v36  ;;  %v341_v51 = vsub.f32 %v1826_v14, %v1873_v48  ;;  %v342_v52 = vsub.f32 %v1823_v12, %v1873_v48  ;;  %v343_v53 = vsub.f32 %v1835_v19, %v1873_v48 }
 0x19c   :  { %v1525_v55 = vpop.f32.mrf.mxu1  ;;  %v344_v56 = vsub.f32 %v1829_v17, %v1873_v48 }
 0x19d   :  { %v263_v57 = vadd.f32 %v262_v50, %v249_v46  ;;  %v264_v59 = vadd.f32 %v262_v50, %v252_v45  ;;  %v265_v60 = vadd.f32 %v262_v50, %v255_v54  ;;  %v1890_v61 = vadd.f32 1e-06, %v341_v51  ;;  %v1431_v55 = vld [vmem:[%s2203_s3 + $0x1] ss:$0 sm:$0xff] }
 0x19e   :  { %v1892_v62 = vadd.f32 1e-06, %v342_v52  ;;  %v1894_v63 = vadd.f32 1e-06, %v343_v53  ;;  %v1896_v0 = vadd.f32 1e-06, %v344_v56  ;;  %v266_v4 = vadd.f32 %v262_v50, %v258_v1 }
 0x19f   :  { %vm267_vm4 = vcmp.ge.f32.partialorder %v263_v57, 0.0  ;;  %v271_v2 = vmul.f32 0.2, %v263_v57  ;;  %vm268_vm5 = vcmp.ge.f32.partialorder %v264_v59, 0.0  ;;  %v272_v3 = vmul.f32 0.2, %v264_v59 }
 0x1a0   :  { %1616 = vlog2.f32 %v1890_v61  ;;  %v273_v8 = vmul.f32 0.2, %v265_v60  ;;  %vm269_vm8 = vcmp.ge.f32.partialorder %v265_v60, 0.0  ;;  %v274_v16 = vmul.f32 0.2, %v266_v4 }
 0x1a1   :  { %v275_v5 = vsel %vm267_vm4, %v263_v57, %v271_v2  ;;  %v276_v7 = vsel %vm268_vm5, %v264_v59, %v272_v3  ;;  %1618 = vlog2.f32 %v1892_v62  ;;  %vm270_vm10 = vcmp.ge.f32.partialorder %v266_v4, 0.0 }
 0x1a2   :  { %v1903_v9 = vsel %vm40_vm3, %v275_v5, -1e+30  ;;  %1620 = vlog2.f32 %v1894_v63  ;;  %v1916_v13 = vsel %vm41_vm7, %v276_v7, -1e+30  ;;  %v277_v15 = vsel %vm269_vm8, %v265_v60, %v273_v8 }
 0x1a3   :  { %v284_v11 = vsel %vm283_vm6, %v1903_v9, -inf  ;;  %1622 = vlog2.f32 %v1896_v0  ;;  %v287_v20 = vsel %vm283_vm6, %v1916_v13, -inf  ;;  %v1928_v21 = vsel %vm42_vm9, %v277_v15, -1e+30 }
 0x1a4   :  { %285 = vmax.xlane.f32.xlu0 %v284_v11  ;;  %v278_v22 = vsel %vm270_vm10, %v266_v4, %v274_v16  ;;  %v290_v23 = vsel %vm283_vm6, %v1928_v21, -inf  ;;  %v733_v56 = vsel %vm730_vm12, %v1835_v19, inf  ;;  %v731_v57 = vsel %vm730_vm12, %v1826_v14, inf }
 0x1a5   :  { %v1935_v24 = vsel %vm43_vm11, %v278_v22, -1e+30  ;;  %v734_v59 = vsel %vm730_vm12, %v1829_v17, inf }
 0x1a6   :  { %v293_v31 = vsel %vm283_vm6, %v1935_v24, -inf  ;;  %v736_v60 = vmin.f32 %v733_v56, %v734_v59 }
 0x1a8   :  { %288 = vmax.xlane.f32.xlu0 %v287_v20 }
 0x1ac   :  { %291 = vmax.xlane.f32.xlu0 %v290_v23 }
 0x1ad   :  { %v1617_v25 = vpop.eup %1616 }
 0x1ae   :  { %v1619_v27 = vpop.eup %1618  ;;  %v350_v28 = vmul.f32 0.6931472, %v1617_v25 }
 0x1af   :  { %v1621_v29 = vpop.eup %1620  ;;  %v352_v30 = vmul.f32 0.6931472, %v1619_v27 }
 0x1b0   :  { %v1623_v32 = vpop.eup %1622  ;;  %v354_v33 = vmul.f32 0.6931472, %v1621_v29  ;;  %v366_v34 = vmul.f32 %v364_v26, %v350_v28  ;;  %294 = vmax.xlane.f32.xlu0 %v293_v31 }
 0x1b1   :  { %v356_v35 = vmul.f32 0.6931472, %v1623_v32  ;;  %v367_v38 = vmul.f32 %v364_v26, %v352_v30 }
 0x1b2   :  { %v368_v39 = vmul.f32 %v364_v26, %v354_v33  ;;  %v370_v40 = vmul.f32 1.442695, %v366_v34 }
 0x1b3   :  { %v369_v41 = vmul.f32 %v364_v26, %v356_v35  ;;  %v372_v42 = vmul.f32 1.442695, %v367_v38  ;;  %v1741_v38 = vmov 1  }
 0x1b4   :  { %1624 = vpow2.f32 %v370_v40  ;;  %v374_v43 = vmul.f32 1.442695, %v368_v39  ;;  %1611 = vset.pattern.permute.xlu0 %v1741_v38 }
 0x1b5   :  { %1626 = vpow2.f32 %v372_v42  ;;  %v376_v44 = vmul.f32 1.442695, %v369_v41 }
 0x1b6   :  { %1628 = vpow2.f32 %v374_v43  ;;  %v535_v43 = vld [vmem:[%s2204_s2 + $0x1] sm:$0x1] }
 0x1b7   :  { %1630 = vpow2.f32 %v376_v44 }
 0x1c1   :  { %v1625_v45 = vpop.eup %1624 }
 0x1c2   :  { %v1627_v46 = vpop.eup %1626  ;;  %v378_v49 = vmul.f32 %v1625_v45, %v1890_v61  ;;  %v732_v61 = vsel %vm730_vm12, %v1823_v12, inf }
 0x1c3   :  { %v1629_v50 = vpop.eup %1628  ;;  %v379_v51 = vmul.f32 %v1627_v46, %v1892_v62  ;;  %v735_v62 = vmin.f32 %v731_v57, %v732_v61 }
 0x1c4   :  { %v1631_v52 = vpop.eup %1630  ;;  %v380_v53 = vmul.f32 %v1629_v50, %v1894_v63 }
 0x1c5   :  { %392 = vrot.lane.b32.xlu1 %v1631_v52, %s1739_s8  ;;  %v381_v54 = vmul.f32 %v1631_v52, %v1896_v0  ;;  %v737_v63 = vmin.f32 %v735_v62, %v736_v60 }
 0x1c6   :  { %390 = vrot.lane.b32.xlu0 %v1629_v50, %s1739_s8 }
 0x1c9   :  { %388 = vrot.lane.b32.xlu1 %v1627_v46, %s1739_s8 }
 0x1ca   :  { %631 = vrot.lane.b32.xlu0 %v1431_v55, %s1739_s8 }
 0x1cd   :  { %386 = vrot.lane.b32.xlu1 %v1625_v45, %s1739_s8 }
 0x1d1   :  { %543 = vrot.lane.b32.xlu1 %v1829_v17, %s1740_s14 }
 0x1d5   :  { %541 = vrot.lane.b32.xlu1 %v1835_v19, %s1740_s14 }
 0x1d9   :  { %539 = vrot.lane.b32.xlu1 %v1823_v12, %s1740_s14 }
 0x1dd   :  { %537 = vrot.lane.b32.xlu1 %v1826_v14, %s1740_s14 }
 0x201   :  { %738 = vmin.xlane.f32.xlu1 %v737_v63 }
 0x22d   :  { %v286_v0 = vpop.xlane.xlu0 %285 }
 0x22e   :  { %v296_v1 = vsub.f32 %v1903_v9, %v286_v0 }
 0x230   :  { %v300_v2 = vmul.f32 1.442695, %v296_v1 }
 0x231   :  { %v289_v3 = vpop.xlane.xlu0 %288 }
 0x232   :  { %1632 = vpow2.f32 %v300_v2  ;;  %v297_v4 = vsub.f32 %v1916_v13, %v289_v3 }
 0x234   :  { %v302_v5 = vmul.f32 1.442695, %v297_v4 }
 0x235   :  { %v292_v7 = vpop.xlane.xlu0 %291 }
 0x236   :  { %1634 = vpow2.f32 %v302_v5  ;;  %v298_v8 = vsub.f32 %v1928_v21, %v292_v7 }
 0x237   :  { %v393_v11 = vpop.permute.xlu1 %392 }
 0x238   :  { %v401_v15 = vsel %vm153_vm2, %v381_v54, %v393_v11  ;;  %v304_v16 = vmul.f32 1.442695, %v298_v8 }
 0x239   :  { %1526 = vmatprep.subr.mxu0 %v401_v15  ;;  %v295_v20 = vpop.xlane.xlu0 %294 }
 0x23a   :  { %1636 = vpow2.f32 %v304_v16  ;;  %1527 = vmatpush3.msra.mxu0 %v401_v15  ;;  %v299_v9 = vsub.f32 %v1935_v24, %v295_v20 }
 0x23b   :  { %v389_v22 = vpop.permute.xlu1 %388 }
 0x23c   :  { %v306_v23 = vmul.f32 1.442695, %v299_v9  ;;  %v399_v21 = vsel %vm153_vm2, %v379_v51, %v389_v22 }
 0x23d   :  { %v391_v25 = vpop.permute.xlu0 %390 }
 0x23e   :  { %1638 = vpow2.f32 %v306_v23  ;;  %v400_v13 = vsel %vm153_vm2, %v380_v53, %v391_v25 }
 0x23f   :  { %v1969_v26 = vpop.eup %1632  ;;  %v387_v27 = vpop.permute.xlu1 %386  ;;  %1528 = vmatprep.subr.mxu0 %v400_v13 }
 0x240   :  { %1529 = vmatpush3.msra.mxu0 %v400_v13  ;;  %1534 = vmatprep.mubr.msk.f32.mxu0 %vm283_vm6, %v1969_v26  ;;  %v398_v24 = vsel %vm153_vm2, %v378_v49, %v387_v27 }
 0x241   :  { %1530 = vmatprep.subr.mxu0 %v399_v21  ;;  %v632_v28 = vpop.permute.xlu0 %631 }
 0x242   :  { %1531 = vmatpush3.msra.mxu0 %v399_v21  ;;  %v634_v29 = vmul.f32 %v632_v28, %v1826_v14  ;;  %v635_v32 = vmul.f32 %v1823_v12, %v632_v28  ;;  %v636_v35 = vmul.f32 %v632_v28, %v1835_v19  ;;  %v637_v41 = vmul.f32 %v1829_v17, %v632_v28 }
 0x243   :  { %v1976_v30 = vpop.eup %1634  ;;  %v544_v31 = vpop.permute.xlu1 %543  ;;  %1532 = vmatprep.subr.mxu0 %v398_v24 }
 0x244   :  { %1533 = vmatpush3.msra.mxu0 %v398_v24  ;;  %642 = vrot.lane.b32.xlu0 %v634_v29, %s1740_s14 }
 0x245   :  { %1535 = vmatmul.mubr.msk.f32.vlgmr.msra.gmra.mxu0 %vm283_vm6, %v1976_v30  ;;  %1540 = vmatprep.subr.mxu0 %v1736_v6 }
 0x246   :  { %1541 = vmatpush3.xpose.msk.msra.mxu0 %vm153_vm2, %v544_v31 }
 0x247   :  { %v1984_v33 = vpop.eup %1636  ;;  %v542_v34 = vpop.permute.xlu1 %541  ;;  %1542 = vmatprep.subr.mxu0 %v1736_v6 }
 0x248   :  { %1537 = vmatprep.mubr.msk.f32.mxu0 %vm283_vm6, %v1984_v33  ;;  %644 = vrot.lane.b32.xlu0 %v635_v32, %s1740_s14 }
 0x24a   :  { %1543 = vmatpush3.xpose.msk.msra.mxu0 %vm153_vm2, %v542_v34 }
 0x24b   :  { %v1992_v39 = vpop.eup %1638  ;;  %v540_v40 = vpop.permute.xlu1 %539  ;;  %1544 = vmatprep.subr.mxu0 %v1736_v6 }
 0x24c   :  { %1538 = vmatmul.mubr.msk.f32.gmra.mxu0 %vm283_vm6, %v1992_v39  ;;  %646 = vrot.lane.b32.xlu0 %v636_v35, %s1740_s14 }
 0x24d   :  { %1548 = vmatprep.mubr.msk.f32.mxu0 %vm1737_vm1, %v1736_v6 }
 0x24e   :  { %1545 = vmatpush3.xpose.msk.msra.mxu0 %vm153_vm2, %v540_v40 }
 0x24f   :  { %1546 = vmatprep.subr.mxu0 %v1736_v6  ;;  %v538_v42 = vpop.permute.xlu1 %537 }
 0x250   :  { %648 = vrot.lane.b32.xlu0 %v637_v41, %s1740_s14 }
 0x252   :  { %1547 = vmatpush3.xpose.msk.msra.mxu0 %vm153_vm2, %v538_v42 }
 0x255   :  { %1549 = vmatmul.mubr.msk.f32.vlgmr.msra.gmra.mxu0 %vm153_vm2, %v535_v43 }
 0x28a   :  { %v739_v44 = vpop.xlane.xlu1 %738 }
 0x28b   :  { %v740_v45 = vrot.slane %v739_v44, 4 }
 0x28d   :  { %v741_v46 = vmin.f32 %v739_v44, %v740_v45 }
 0x28f   :  { %v742_v49 = vrot.slane %v741_v46, 2 }
 0x291   :  { %v743_v50 = vmin.f32 %v741_v46, %v742_v49 }
 0x293   :  { %v744_v51 = vrot.slane %v743_v50, 1 }
 0x295   :  { %v745_v52 = vmin.f32 %v743_v50, %v744_v51 }
 0x297   :  { %1602 = vpush %v745_v52 }
 0x2b6   :  { %v643_v53 = vpop.permute.xlu0 %642 }
 0x2b7   :  { %v654_v54 = vsel %vm153_vm2, %v643_v53, 0.0 }
 0x2b8   :  { %655 = vadd.xlane.f32.xlu0 %v654_v54 }
 0x2ba   :  { %v645_v55 = vpop.permute.xlu0 %644 }
 0x2bb   :  { %v657_v56 = vsel %vm153_vm2, %v645_v55, 0.0 }
 0x2bc   :  { %658 = vadd.xlane.f32.xlu1 %v657_v56 }
 0x2be   :  { %v647_v57 = vpop.permute.xlu0 %646 }
 0x2bf   :  { %v660_v59 = vsel %vm153_vm2, %v647_v57, 0.0 }
 0x2c0   :  { %661 = vadd.xlane.f32.xlu1 %v660_v59 }
 0x2c2   :  { %v649_v60 = vpop.permute.xlu0 %648 }
 0x2c3   :  { %v663_v61 = vsel %vm153_vm2, %v649_v60, 0.0 }
 0x2c4   :  { %664 = vadd.xlane.f32.xlu1 %v663_v61 }
 0x2c8   :  { %s1603_s2 = spop %1602 }
 0x2c9   :  { %v2022_v4 = vstv %s1603_s2 }
 0x2ca   :  { %v750_v5 = vsub.f32 %v1835_v19, %v2022_v4  ;;  %v751_v7 = vsub.f32 %v1829_v17, %v2022_v4  ;;  %v749_v8 = vsub.f32 %v1823_v12, %v2022_v4  ;;  %v748_v40 = vsub.f32 %v1826_v14, %v2022_v4 }
 0x2cc   :  { %v755_v11 = vadd.f32 1e-06, %v751_v7  ;;  %v753_v15 = vadd.f32 1e-06, %v749_v8  ;;  %v752_v42 = vadd.f32 1e-06, %v748_v40 }
 0x2ce   :  { %765 = vperm.xlu0 %1611, %v1865_v37   ;;  %v754_v37 = vadd.f32 1e-06, %v750_v5 }
 0x2d0   :  { %1640 = vlog2.f32 %v754_v37 }
 0x2d1   :  { %1642 = vlog2.f32 %v755_v11 }
 0x2d2   :  { %1644 = vlog2.f32 %v753_v15 }
 0x2dd   :  { %v1641_v16 = vpop.eup %1640 }
 0x2de   :  { %v1643_v9 = vpop.eup %1642  ;;  %v761_v22 = vmul.f32 0.6931472, %v1641_v16 }
 0x2df   :  { %v763_v23 = vmul.f32 0.6931472, %v1643_v9  ;;  %v1645_v13 = vpop.eup %1644 }
 0x2e0   :  { %v759_v21 = vmul.f32 0.6931472, %v1645_v13 }
 0x305   :  { %v2014_v62 = vpop.f32.mrf.mxu0 }
 0x307   :  { %v2016_v63 = vpop.f32.mrf.mxu0 }
 0x30c   :  { %v2018_v0 = vpop.f32.mrf.mxu0 }
 0x30e   :  { %v2020_v1 = vpop.f32.mrf.mxu0 }
 0x315   :  { %v622_v2 = vpop.f32.mrf.mxu0 }
 0x316   :  { %v669_v41 = vrot.slane %v622_v2, %v1861_v36 }
 0x317   :  { %v1550_v3 = vpop.f32.mrf.mxu0 }
 0x341   :  { %v656_v20 = vpop.xlane.xlu0 %655 }
 0x342   :  { %v670_v44 = vadd.f32 %v669_v41, %v656_v20 }
 0x344   :  { %v678_v46 = vmul.f32 0.2, %v670_v44  ;;  %vm674_vm13 = vcmp.ge.f32.partialorder %v670_v44, 0.0 }
 0x345   :  { %v659_v43 = vpop.xlane.xlu1 %658 }
 0x346   :  { %v671_v49 = vadd.f32 %v669_v41, %v659_v43  ;;  %v682_v52 = vsel %vm674_vm13, %v670_v44, %v678_v46 }
 0x347   :  { %v686_v54 = vsel %vm40_vm3, %v682_v52, -1e+30  ;;  %v308_v52 = vsel %vm283_vm6, %v1969_v26, 0.0  ;;  %v317_v26 = vsel %vm283_vm6, %v1992_v39, 0.0 }
 0x348   :  { %v679_v50 = vmul.f32 0.2, %v671_v49  ;;  %vm675_vm14 = vcmp.ge.f32.partialorder %v671_v49, 0.0  ;;  %v690_v59 = vsel %vm283_vm6, %v686_v54, -inf }
 0x349   :  { %v766_v25 = vpop.permute.xlu0 %765  ;;  %v662_v45 = vpop.xlane.xlu1 %661 }
 0x34a   :  { %v770_v19 = vmul.f32 %v766_v25, %v761_v22  ;;  %v771_v27 = vmul.f32 %v766_v25, %v763_v23  ;;  %v769_v28 = vmul.f32 %v766_v25, %v759_v21  ;;  %v672_v51 = vadd.f32 %v669_v41, %v662_v45 }
 0x34b   :  { %v683_v56 = vsel %vm675_vm14, %v671_v49, %v679_v50 }
 0x34c   :  { %v778_v17 = vmul.f32 1.442695, %v771_v27  ;;  %v776_v24 = vmul.f32 1.442695, %v770_v19  ;;  %v774_v12 = vmul.f32 1.442695, %v769_v28 }
 0x34d   :  { %v665_v53 = vpop.xlane.xlu1 %664  ;;  %v680_v55 = vmul.f32 0.2, %v672_v51  ;;  %vm676_vm15 = vcmp.ge.f32.partialorder %v672_v51, 0.0  ;;  %v687_v60 = vsel %vm41_vm7, %v683_v56, -1e+30 }
 0x34e   :  { %1646 = vpow2.f32 %v778_v17  ;;  %v673_v14 = vadd.f32 %v669_v41, %v665_v53  ;;  %v693_v7 = vsel %vm283_vm6, %v687_v60, -inf }
 0x34f   :  { %1648 = vpow2.f32 %v776_v24  ;;  %v684_v3 = vsel %vm676_vm15, %v672_v51, %v680_v55  ;;  %v314_v55 = vsel %vm283_vm6, %v1984_v33, 0.0 }
 0x350   :  { %1650 = vpow2.f32 %v774_v12  ;;  %v681_v2 = vmul.f32 0.2, %v673_v14  ;;  %vm677_vm4 = vcmp.ge.f32.partialorder %v673_v14, 0.0 }
 0x351   :  { %1652 = vlog2.f32 %v752_v42 }
 0x352   :  { %v685_v8 = vsel %vm677_vm4, %v673_v14, %v681_v2  ;;  %v311_v14 = vsel %vm283_vm6, %v1976_v30, 0.0 }
 0x353   :  { %v689_v16 = vsel %vm43_vm11, %v685_v8, -1e+30 }
 0x354   :  { %v699_v20 = vsel %vm283_vm6, %v689_v16, -inf }
 0x35b   :  { %v1647_v29 = vpop.eup %1646 }
 0x35c   :  { %v783_v31 = vmul.f32 %v1647_v29, %v755_v11  ;;  %v1649_v32 = vpop.eup %1648 }
 0x35d   :  { %v782_v34 = vmul.f32 %v1649_v32, %v754_v37  ;;  %v1651_v35 = vpop.eup %1650  ;;  %v688_v37 = vsel %vm42_vm9, %v684_v3, -1e+30 }
 0x35e   :  { %794 = vrot.lane.b32.xlu1 %v783_v31, %s1740_s14  ;;  %v781_v38 = vmul.f32 %v1651_v35, %v753_v15  ;;  %v1653_v57 = vpop.eup %1652  ;;  %v696_v15 = vsel %vm283_vm6, %v688_v37, -inf }
 0x35f   :  { %v757_v61 = vmul.f32 0.6931472, %v1653_v57 }
 0x361   :  { %v768_v5 = vmul.f32 %v766_v25, %v757_v61 }
 0x362   :  { %792 = vrot.lane.b32.xlu1 %v782_v34, %s1740_s14 }
 0x363   :  { %v772_v11 = vmul.f32 1.442695, %v768_v5 }
 0x365   :  { %1654 = vpow2.f32 %v772_v11 }
 0x366   :  { %790 = vrot.lane.b32.xlu1 %v781_v38, %s1740_s14 }
 0x372   :  { %v1655_v9 = vpop.eup %1654 }
 0x373   :  { %v780_v22 = vmul.f32 %v1655_v9, %v752_v42 }
 0x38a   :  { %691 = vmax.xlane.f32.xlu1 %v690_v59 }
 0x38e   :  { %694 = vmax.xlane.f32.xlu1 %v693_v7 }
 0x392   :  { %697 = vmax.xlane.f32.xlu1 %v696_v15 }
 0x396   :  { %700 = vmax.xlane.f32.xlu1 %v699_v20 }
 0x3a7   :  { %788 = vrot.lane.b32.xlu1 %v780_v22, %s1740_s14 }
 0x3d0   :  { %v795_v23 = vpop.permute.xlu1 %794 }
 0x3d1   :  { %v803_v25 = vsel %vm153_vm2, %v795_v23, %v1647_v29 }
 0x3d2   :  { %1551 = vmatprep.subr.mxu1 %v803_v25 }
 0x3d3   :  { %1552 = vmatpush3.msra.mxu1 %v803_v25 }
 0x3d4   :  { %v793_v13 = vpop.permute.xlu1 %792 }
 0x3d5   :  { %v802_v19 = vsel %vm153_vm2, %v793_v13, %v1649_v32 }
 0x3d6   :  { %1553 = vmatprep.subr.mxu1 %v802_v19 }
 0x3d7   :  { %1554 = vmatpush3.msra.mxu1 %v802_v19 }
 0x3d8   :  { %v791_v27 = vpop.permute.xlu1 %790 }
 0x3d9   :  { %v801_v21 = vsel %vm153_vm2, %v791_v27, %v1651_v35 }
 0x3da   :  { %1555 = vmatprep.subr.mxu1 %v801_v21 }
 0x3db   :  { %1556 = vmatpush3.msra.mxu1 %v801_v21 }
 0x413   :  { %v692_v17 = vpop.xlane.xlu1 %691 }
 0x414   :  { %v702_v28 = vsub.f32 %v686_v54, %v692_v17 }
 0x416   :  { %v706_v24 = vmul.f32 1.442695, %v702_v28 }
 0x417   :  { %v695_v12 = vpop.xlane.xlu1 %694 }
 0x418   :  { %1656 = vpow2.f32 %v706_v24  ;;  %v703_v31 = vsub.f32 %v687_v60, %v695_v12 }
 0x41a   :  { %v708_v34 = vmul.f32 1.442695, %v703_v31 }
 0x41b   :  { %v698_v29 = vpop.xlane.xlu1 %697 }
 0x41c   :  { %1658 = vpow2.f32 %v708_v34  ;;  %v704_v38 = vsub.f32 %v688_v37, %v698_v29 }
 0x41e   :  { %v710_v40 = vmul.f32 1.442695, %v704_v38 }
 0x41f   :  { %v701_v41 = vpop.xlane.xlu1 %700 }
 0x420   :  { %1660 = vpow2.f32 %v710_v40  ;;  %v705_v32 = vsub.f32 %v689_v16, %v701_v41 }
 0x422   :  { %v712_v42 = vmul.f32 1.442695, %v705_v32 }
 0x423   :  { %v789_v43 = vpop.permute.xlu1 %788 }
 0x424   :  { %1662 = vpow2.f32 %v712_v42  ;;  %v800_v35 = vsel %vm153_vm2, %v789_v43, %v1655_v9 }
 0x425   :  { %v1657_v44 = vpop.eup %1656  ;;  %1557 = vmatprep.subr.mxu1 %v800_v35 }
 0x426   :  { %1558 = vmatpush3.msra.mxu1 %v800_v35  ;;  %1559 = vmatprep.mubr.msk.f32.mxu1 %vm283_vm6, %v1657_v44  ;;  %v714_v45 = vsel %vm283_vm6, %v1657_v44, 0.0  ;;  %v958_v44 = vld [vmem:[%s2206_s5 + $0x8] sm:$0xff] }
 0x427   :  { %715 = vadd.xlane.f32.xlu0 %v714_v45  ;;  %1575 = vmatprep.subr.mxu1 %v1736_v6  ;;  %v957_v45 = vld [vmem:[%s2206_s5] sm:$0xff] }
 0x428   :  { %1565 = vmatprep.subr.mxu0 %v958_v44 }
 0x429   :  { %v1659_v46 = vpop.eup %1658  ;;  %1566 = vmatpush3.msra.mxu0 %v958_v44 }
 0x42a   :  { %1560 = vmatmul.mubr.msk.f32.vlgmr.msra.gmra.mxu1 %vm283_vm6, %v1659_v46  ;;  %v717_v49 = vsel %vm283_vm6, %v1659_v46, 0.0  ;;  %1567 = vmatprep.subr.mxu0 %v957_v45 }
 0x42b   :  { %718 = vadd.xlane.f32.xlu1 %v717_v49  ;;  %1568 = vmatpush3.msra.mxu0 %v957_v45 }
 0x42d   :  { %v1661_v50 = vpop.eup %1660 }
 0x42e   :  { %1562 = vmatprep.mubr.msk.f32.mxu1 %vm283_vm6, %v1661_v50  ;;  %v720_v51 = vsel %vm283_vm6, %v1661_v50, 0.0 }
 0x42f   :  { %721 = vadd.xlane.f32.xlu0 %v720_v51  ;;  %309 = vadd.xlane.f32.xlu1 %v308_v52 }
 0x431   :  { %v1663_v53 = vpop.eup %1662 }
 0x432   :  { %1563 = vmatmul.mubr.msk.f32.gmra.mxu1 %vm283_vm6, %v1663_v53  ;;  %v723_v54 = vsel %vm283_vm6, %v1663_v53, 0.0 }
 0x433   :  { %724 = vadd.xlane.f32.xlu0 %v723_v54  ;;  %315 = vadd.xlane.f32.xlu1 %v314_v55 }
 0x434   :  { %1583 = vmatprep.mubr.msk.f32.mxu1 %vm1737_vm1, %v1736_v6  ;;  %vm1058_vm1 = vcmask 31744  }
 0x437   :  { %312 = vadd.xlane.f32.xlu0 %v311_v14 }
 0x43b   :  { %318 = vadd.xlane.f32.xlu0 %v317_v26 }
 0x4b0   :  { %v716_v56 = vpop.xlane.xlu0 %715 }
 0x4b4   :  { %v719_v59 = vpop.xlane.xlu1 %718 }
 0x4b8   :  { %v722_v57 = vpop.xlane.xlu0 %721  ;;  %v310_v61 = vpop.xlane.xlu1 %309 }
 0x4b9   :  { %1664 = vrcp.f32 %v310_v61 }
 0x4ba   :  { %1666 = vrcp.f32 %v719_v59 }
 0x4bb   :  { %1668 = vrcp.f32 %v716_v56 }
 0x4bc   :  { %v725_v60 = vpop.xlane.xlu0 %724  ;;  %v316_v33 = vpop.xlane.xlu1 %315 }
 0x4bd   :  { %1670 = vrcp.f32 %v316_v33 }
 0x4c0   :  { %v313_v2 = vpop.xlane.xlu0 %312 }
 0x4c4   :  { %v319_v3 = vpop.xlane.xlu0 %318 }
 0x4c5   :  { %1672 = vrcp.f32 %v319_v3 }
 0x4c6   :  { %1674 = vrcp.f32 %v722_v57  ;;  %v1665_v30 = vpop.eup %1664 }
 0x4c7   :  { %1676 = vrcp.f32 %v725_v60  ;;  %v1667_v5 = vpop.eup %1666  ;;  %v2073_v37 = vmul.f32 %v1665_v30, %v2016_v63 }
 0x4c8   :  { %1678 = vrcp.f32 %v313_v2  ;;  %v1669_v7 = vpop.eup %1668 }
 0x4c9   :  { %v503_v9 = vadd.f32 1e-06, %v2073_v37 }
 0x4ca   :  { %v1671_v11 = vpop.eup %1670 }
 0x4cb   :  { %v2077_v22 = vmul.f32 %v1671_v11, %v2020_v1 }
 0x4cd   :  { %v505_v63 = vadd.f32 1e-06, %v2077_v22 }
 0x4d2   :  { %v1673_v25 = vpop.eup %1672 }
 0x4d3   :  { %v1675_v19 = vpop.eup %1674  ;;  %v2081_v27 = vmul.f32 %v1673_v25, %v2018_v0  ;;  %v1445_v25 = vld [vmem:[%s2207_s7] ss:$0 sm:$0xff] }
 0x4d4   :  { %v1677_v21 = vpop.eup %1676 }
 0x4d5   :  { %v1679_v12 = vpop.eup %1678  ;;  %v506_v1 = vadd.f32 1e-06, %v2081_v27 }
 0x4d6   :  { %v500_v34 = vmul.f32 %v1679_v12, %v2014_v62 }
 0x4d8   :  { %v504_v40 = vadd.f32 1e-06, %v500_v34 }
 0x4ea   :  { %v1561_v39 = vpop.f32.mrf.mxu1 }
 0x4eb   :  { %v902_v8 = vmul.f32 %v1667_v5, %v1561_v39 }
 0x4ec   :  { %v882_v15 = vpop.f32.mrf.mxu1 }
 0x4ed   :  { %v906_v16 = vadd.f32 1e-06, %v902_v8  ;;  %v901_v20 = vmul.f32 %v1669_v7, %v882_v15 }
 0x4ef   :  { %1680 = vrcp.f32 %v906_v16  ;;  %v905_v23 = vadd.f32 1e-06, %v901_v20 }
 0x4f1   :  { %1682 = vrcp.f32 %v905_v23 }
 0x4f2   :  { %v1564_v13 = vpop.f32.mrf.mxu1  ;;  %1684 = vrcp.f32 %v503_v9 }
 0x4f3   :  { %v904_v28 = vmul.f32 %v1677_v21, %v1564_v13  ;;  %1686 = vrcp.f32 %v505_v63 }
 0x4f4   :  { %v892_v17 = vpop.f32.mrf.mxu1 }
 0x4f5   :  { %v903_v24 = vmul.f32 %v1675_v19, %v892_v17  ;;  %v908_v29 = vadd.f32 1e-06, %v904_v28 }
 0x4f7   :  { %v907_v31 = vadd.f32 1e-06, %v903_v24 }
 0x4f9   :  { %1688 = vrcp.f32 %v907_v31 }
 0x4fa   :  { %1690 = vrcp.f32 %v506_v1 }
 0x4fb   :  { %1692 = vrcp.f32 %v908_v29 }
 0x4fc   :  { %v1681_v38 = vpop.eup %1680  ;;  %1694 = vrcp.f32 %v504_v40 }
 0x4fd   :  { %919 = vrot.lane.b32.xlu0 %v1681_v38, %s1740_s14 }
 0x4fe   :  { %v1683_v0 = vpop.eup %1682 }
 0x4ff   :  { %917 = vrot.lane.b32.xlu1 %v1683_v0, %s1740_s14  ;;  %v1685_v41 = vpop.eup %1684 }
 0x500   :  { %v1687_v32 = vpop.eup %1686 }
 0x501   :  { %515 = vrot.lane.b32.xlu0 %v1685_v41, %s1740_s14 }
 0x505   :  { %519 = vrot.lane.b32.xlu0 %v1687_v32, %s1740_s14 }
 0x506   :  { %v1689_v42 = vpop.eup %1688 }
 0x507   :  { %921 = vrot.lane.b32.xlu1 %v1689_v42, %s1740_s14  ;;  %v1691_v62 = vpop.eup %1690 }
 0x508   :  { %v1693_v43 = vpop.eup %1692 }
 0x509   :  { %521 = vrot.lane.b32.xlu0 %v1691_v62, %s1740_s14  ;;  %v1695_v35 = vpop.eup %1694 }
 0x50b   :  { %923 = vrot.lane.b32.xlu1 %v1693_v43, %s1740_s14 }
 0x50f   :  { %517 = vrot.lane.b32.xlu1 %v1695_v35, %s1740_s14 }
 0x56f   :  { %v920_v46 = vpop.permute.xlu0 %919 }
 0x570   :  { %v930_v51 = vmul.f32 %v920_v46, %v902_v8 }
 0x571   :  { %v918_v49 = vpop.permute.xlu1 %917 }
 0x572   :  { %v929_v50 = vmul.f32 %v918_v49, %v901_v20  ;;  %v934_v53 = vadd.f32 %v930_v51, %v2022_v4 }
 0x573   :  { %v516_v59 = vpop.permute.xlu0 %515 }
 0x574   :  { %v933_v52 = vadd.f32 %v929_v50, %v2022_v4  ;;  %v527_v60 = vmul.f32 %v516_v59, %v2073_v37 }
 0x576   :  { %941 = vrot.lane.b32.xlu1 %v933_v52, %s1739_s8  ;;  %v531_v33 = vadd.f32 %v527_v60, %v1873_v48 }
 0x577   :  { %v520_v2 = vpop.permute.xlu0 %519 }
 0x578   :  { %v529_v39 = vmul.f32 %v520_v2, %v2077_v22 }
 0x579   :  { %v922_v54 = vpop.permute.xlu1 %921 }
 0x57a   :  { %v931_v55 = vmul.f32 %v922_v54, %v903_v24  ;;  %943 = vrot.lane.b32.xlu1 %v934_v53, %s1739_s8  ;;  %v533_v37 = vadd.f32 %v529_v39, %v1873_v48 }
 0x57c   :  { %v935_v14 = vadd.f32 %v931_v55, %v2022_v4 }
 0x57d   :  { %v924_v26 = vpop.permute.xlu1 %923 }
 0x57e   :  { %v932_v56 = vmul.f32 %v924_v26, %v904_v28  ;;  %945 = vrot.lane.b32.xlu0 %v935_v14, %s1739_s8 }
 0x580   :  { %v936_v57 = vadd.f32 %v932_v56, %v2022_v4  ;;  %v522_v4 = vpop.permute.xlu0 %521 }
 0x581   :  { %v518_v61 = vpop.permute.xlu1 %517  ;;  %v530_v15 = vmul.f32 %v522_v4, %v2081_v27 }
 0x582   :  { %947 = vrot.lane.b32.xlu1 %v936_v57, %s1739_s8  ;;  %v528_v3 = vmul.f32 %v518_v61, %v500_v34  ;;  %v1056_v34 = vld [vmem:[%s2208_s6] sm:$0x1] }
 0x583   :  { %v534_v9 = vadd.f32 %v530_v15, %v1873_v48 }
 0x584   :  { %v532_v7 = vadd.f32 %v528_v3, %v1873_v48 }
 0x5e8   :  { %v942_v30 = vpop.permute.xlu1 %941 }
 0x5e9   :  { %v953_v5 = vsel %vm153_vm2, %v531_v33, %v942_v30 }
 0x5ea   :  { %1569 = vmatprep.mubr.msk.f32.mxu0 %vm46_vm0, %v953_v5 }
 0x5ec   :  { %v944_v8 = vpop.permute.xlu1 %943 }
 0x5ed   :  { %v954_v11 = vsel %vm153_vm2, %v532_v7, %v944_v8 }
 0x5ee   :  { %1570 = vmatmul.mubr.msk.f32.vlgmr.msra.gmra.mxu0 %vm46_vm0, %v954_v11 }
 0x5f0   :  { %v946_v16 = vpop.permute.xlu0 %945 }
 0x5f1   :  { %v955_v20 = vsel %vm153_vm2, %v533_v37, %v946_v16 }
 0x5f2   :  { %1572 = vmatprep.mubr.msk.f32.mxu0 %vm46_vm0, %v955_v20 }
 0x5f4   :  { %v948_v22 = vpop.permute.xlu1 %947 }
 0x5f5   :  { %v956_v23 = vsel %vm153_vm2, %v534_v9, %v948_v22 }
 0x5f6   :  { %1573 = vmatmul.mubr.msk.f32.gmra.mxu0 %vm46_vm0, %v956_v23 }
 0x6ae   :  { %v1571_v13 = vpop.f32.mrf.mxu0 }
 0x6af   :  { %v1151_v19 = vmul.f32 %v1571_v13, %v1445_v25 }
 0x6b0   :  { %v1037_v63 = vpop.f32.mrf.mxu0 }
 0x6b1   :  { %v1157_v27 = vsel %vm1058_vm1, %v1151_v19, 0.0  ;;  %v1150_v21 = vmul.f32 %v1445_v25, %v1037_v63 }
 0x6b2   :  { %1158 = vadd.xlane.f32.xlu1 %v1157_v27 }
 0x6b3   :  { %v1154_v17 = vsel %vm1058_vm1, %v1150_v21, 0.0 }
 0x6b4   :  { %1155 = vadd.xlane.f32.xlu0 %v1154_v17 }
 0x6b6   :  { %v1574_v48 = vpop.f32.mrf.mxu0 }
 0x6b7   :  { %1576 = vmatpush3.xpose.msk.msra.mxu1 %vm1058_vm1, %v1574_v48  ;;  %1586 = vmatprep.subr.mxu0 %v1574_v48  ;;  %v1153_v1 = vmul.f32 %v1574_v48, %v1445_v25 }
 0x6b8   :  { %v1047_v28 = vpop.f32.mrf.mxu0  ;;  %1587 = vmatpush3.msra.mxu0 %v1574_v48  ;;  %1577 = vmatprep.subr.mxu1 %v1736_v6 }
 0x6b9   :  { %1588 = vmatprep.subr.mxu0 %v1047_v28  ;;  %v1152_v24 = vmul.f32 %v1445_v25, %v1047_v28  ;;  %v1163_v31 = vsel %vm1058_vm1, %v1153_v1, 0.0 }
 0x6ba   :  { %1589 = vmatpush3.msra.mxu0 %v1047_v28 }
 0x6bb   :  { %1578 = vmatpush3.xpose.msk.msra.mxu1 %vm1058_vm1, %v1047_v28  ;;  %1590 = vmatprep.subr.mxu0 %v1571_v13  ;;  %v1160_v12 = vsel %vm1058_vm1, %v1152_v24, 0.0 }
 0x6bc   :  { %1591 = vmatpush3.msra.mxu0 %v1571_v13  ;;  %1161 = vadd.xlane.f32.xlu0 %v1160_v12 }
 0x6bd   :  { %1592 = vmatprep.subr.mxu0 %v1037_v63  ;;  %1579 = vmatprep.subr.mxu1 %v1736_v6 }
 0x6be   :  { %1593 = vmatpush3.msra.mxu0 %v1037_v63 }
 0x6bf   :  { %1580 = vmatpush3.xpose.msk.msra.mxu1 %vm1058_vm1, %v1571_v13 }
 0x6c0   :  { %1164 = vadd.xlane.f32.xlu0 %v1163_v31  ;;  %1581 = vmatprep.subr.mxu1 %v1736_v6 }
 0x6c3   :  { %1582 = vmatpush3.xpose.msk.msra.mxu1 %vm1058_vm1, %v1037_v63 }
 0x6c6   :  { %1584 = vmatmul.mubr.msk.f32.vlgmr.msra.gmra.mxu1 %vm1058_vm1, %v1056_v34 }
 0x73b   :  { %v1159_v0 = vpop.xlane.xlu1 %1158 }
 0x73d   :  { %v1156_v29 = vpop.xlane.xlu0 %1155 }
 0x745   :  { %v1162_v38 = vpop.xlane.xlu0 %1161 }
 0x749   :  { %v1165_v32 = vpop.xlane.xlu0 %1164 }
 0x786   :  { %v1140_v40 = vpop.f32.mrf.mxu1 }
 0x787   :  { %v1169_v41 = vrot.slane %v1140_v40, %v1861_v36 }
 0x788   :  { %v1585_v42 = vpop.f32.mrf.mxu1 }
 0x789   :  { %v1170_v62 = vadd.f32 %v1169_v41, %v1156_v29  ;;  %v1171_v43 = vadd.f32 %v1169_v41, %v1159_v0  ;;  %v1172_v35 = vadd.f32 %v1169_v41, %v1162_v38  ;;  %v1173_v6 = vadd.f32 %v1169_v41, %v1165_v32 }
 0x78b   :  { %vm1174_vm0 = vcmp.ge.f32.partialorder %v1170_v62, 0.0  ;;  %v1178_v44 = vmul.f32 0.2, %v1170_v62  ;;  %vm1175_vm2 = vcmp.ge.f32.partialorder %v1171_v43, 0.0  ;;  %v1179_v45 = vmul.f32 0.2, %v1171_v43 }
 0x78c   :  { %vm1176_vm5 = vcmp.ge.f32.partialorder %v1172_v35, 0.0  ;;  %v1180_v46 = vmul.f32 0.2, %v1172_v35  ;;  %vm1177_vm8 = vcmp.ge.f32.partialorder %v1173_v6, 0.0  ;;  %v1181_v49 = vmul.f32 0.2, %v1173_v6 }
 0x78d   :  { %v1182_v50 = vsel %vm1174_vm0, %v1170_v62, %v1178_v44  ;;  %v1183_v51 = vsel %vm1175_vm2, %v1171_v43, %v1179_v45 }
 0x78e   :  { %v1186_v52 = vsel %vm40_vm3, %v1182_v50, -1e+30  ;;  %v1187_v36 = vsel %vm41_vm7, %v1183_v51, -1e+30  ;;  %v1184_v53 = vsel %vm1176_vm5, %v1172_v35, %v1180_v46  ;;  %v1185_v54 = vsel %vm1177_vm8, %v1173_v6, %v1181_v49 }
 0x78f   :  { %v1190_v55 = vsel %vm283_vm6, %v1186_v52, -inf  ;;  %v1193_v14 = vsel %vm283_vm6, %v1187_v36, -inf  ;;  %v1188_v26 = vsel %vm42_vm9, %v1184_v53, -1e+30  ;;  %v1189_v56 = vsel %vm43_vm11, %v1185_v54, -1e+30 }
 0x790   :  { %1191 = vmax.xlane.f32.xlu1 %v1190_v55  ;;  %1194 = vmax.xlane.f32.xlu0 %v1193_v14  ;;  %v1196_v47 = vsel %vm283_vm6, %v1188_v26, -inf  ;;  %v1199_v57 = vsel %vm283_vm6, %v1189_v56, -inf }
 0x794   :  { %1197 = vmax.xlane.f32.xlu1 %v1196_v47  ;;  %1200 = vmax.xlane.f32.xlu0 %v1199_v57 }
 0x819   :  { %v1195_v58 = vpop.xlane.xlu0 %1194  ;;  %v1192_v59 = vpop.xlane.xlu1 %1191 }
 0x81a   :  { %v1203_v60 = vsub.f32 %v1187_v36, %v1195_v58  ;;  %v1202_v61 = vsub.f32 %v1186_v52, %v1192_v59 }
 0x81c   :  { %v1208_v2 = vmul.f32 1.442695, %v1203_v60  ;;  %v1206_v33 = vmul.f32 1.442695, %v1202_v61 }
 0x81d   :  { %v1201_v3 = vpop.xlane.xlu0 %1200  ;;  %v1198_v30 = vpop.xlane.xlu1 %1197 }
 0x81e   :  { %1696 = vpow2.f32 %v1208_v2  ;;  %v1205_v10 = vsub.f32 %v1189_v56, %v1201_v3  ;;  %v1204_v5 = vsub.f32 %v1188_v26, %v1198_v30 }
 0x81f   :  { %1698 = vpow2.f32 %v1206_v33 }
 0x820   :  { %v1212_v18 = vmul.f32 1.442695, %v1205_v10  ;;  %v1210_v39 = vmul.f32 1.442695, %v1204_v5 }
 0x822   :  { %1700 = vpow2.f32 %v1212_v18 }
 0x823   :  { %1702 = vpow2.f32 %v1210_v39 }
 0x82b   :  { %v1697_v7 = vpop.eup %1696 }
 0x82c   :  { %v1699_v4 = vpop.eup %1698  ;;  %v1217_v8 = vsel %vm283_vm6, %v1697_v7, 0.0 }
 0x82d   :  { %1594 = vmatprep.mubr.msk.f32.mxu0 %vm283_vm6, %v1699_v4  ;;  %1218 = vadd.xlane.f32.xlu0 %v1217_v8  ;;  %v1214_v11 = vsel %vm283_vm6, %v1699_v4, 0.0 }
 0x82e   :  { %1595 = vmatmul.mubr.msk.f32.vlgmr.msra.gmra.mxu0 %vm283_vm6, %v1697_v7  ;;  %1215 = vadd.xlane.f32.xlu1 %v1214_v11 }
 0x82f   :  { %v1701_v37 = vpop.eup %1700 }
 0x830   :  { %v1703_v15 = vpop.eup %1702  ;;  %v1223_v16 = vsel %vm283_vm6, %v1701_v37, 0.0 }
 0x831   :  { %1597 = vmatprep.mubr.msk.f32.mxu0 %vm283_vm6, %v1703_v15  ;;  %1224 = vadd.xlane.f32.xlu0 %v1223_v16  ;;  %v1220_v20 = vsel %vm283_vm6, %v1703_v15, 0.0 }
 0x832   :  { %1598 = vmatmul.mubr.msk.f32.gmra.mxu0 %vm283_vm6, %v1701_v37  ;;  %1221 = vadd.xlane.f32.xlu1 %v1220_v20 }
 0x8b6   :  { %v1219_v9 = vpop.xlane.xlu0 %1218 }
 0x8b7   :  { %v1216_v22 = vpop.xlane.xlu1 %1215  ;;  %1704 = vrcp.f32 %v1219_v9 }
 0x8b8   :  { %1706 = vrcp.f32 %v1216_v22 }
 0x8ba   :  { %v1225_v23 = vpop.xlane.xlu0 %1224 }
 0x8bb   :  { %v1222_v25 = vpop.xlane.xlu1 %1221  ;;  %1708 = vrcp.f32 %v1225_v23 }
 0x8bc   :  { %1710 = vrcp.f32 %v1222_v25 }
 0x8c4   :  { %v1705_v13 = vpop.eup %1704 }
 0x8c5   :  { %v1707_v27 = vpop.eup %1706 }
 0x8c8   :  { %v1709_v28 = vpop.eup %1708 }
 0x8c9   :  { %v1711_v31 = vpop.eup %1710 }
 0x8ee   :  { %v1596_v19 = vpop.f32.mrf.mxu0 }
 0x8ef   :  { %v1328_v63 = vmul.f32 %v1705_v13, %v1596_v19 }
 0x8f0   :  { %v1308_v21 = vpop.f32.mrf.mxu0 }
 0x8f1   :  { %v1337_v17 = vmul.f32 1.442695, %v1328_v63  ;;  %v1327_v48 = vmul.f32 %v1707_v27, %v1308_v21  ;;  %vm1332_vm3 = vcmp.gt.f32.partialorder %v1328_v63, 0.0 }
 0x8f2   :  { %v1599_v24 = vpop.f32.mrf.mxu0 }
 0x8f3   :  { %1712 = vpow2.f32 %v1337_v17  ;;  %v1335_v12 = vmul.f32 1.442695, %v1327_v48  ;;  %v1330_v1 = vmul.f32 %v1709_v28, %v1599_v24  ;;  %vm1331_vm6 = vcmp.gt.f32.partialorder %v1327_v48, 0.0 }
 0x8f4   :  { %v1318_v34 = vpop.f32.mrf.mxu0 }
 0x8f5   :  { %1714 = vpow2.f32 %v1335_v12  ;;  %v1341_v29 = vmul.f32 1.442695, %v1330_v1  ;;  %v1329_v38 = vmul.f32 %v1711_v31, %v1318_v34  ;;  %vm1334_vm7 = vcmp.gt.f32.partialorder %v1330_v1, 0.0 }
 0x8f7   :  { %1716 = vpow2.f32 %v1341_v29  ;;  %v1339_v40 = vmul.f32 1.442695, %v1329_v38  ;;  %vm1333_vm9 = vcmp.gt.f32.partialorder %v1329_v38, 0.0 }
 0x8f9   :  { %1718 = vpow2.f32 %v1339_v40 }
 0x900   :  { %v1713_v0 = vpop.eup %1712 }
 0x901   :  { %v1451_v41 = vadd.f32 -1.0, %v1713_v0 }
 0x902   :  { %v1715_v32 = vpop.eup %1714 }
 0x903   :  { %v2161_v42 = vsel %vm1332_vm3, %v1328_v63, %v1451_v41  ;;  %v1450_v62 = vadd.f32 -1.0, %v1715_v32 }
 0x904   :  { %v1717_v43 = vpop.eup %1716  ;;  %v1354_v35 = vsel %vm1058_vm1, %v2161_v42, -inf }
 0x905   :  { %1355 = vmax.xlane.f32.xlu0 %v1354_v35  ;;  %v2165_v6 = vsel %vm1331_vm6, %v1327_v48, %v1450_v62  ;;  %v1453_v44 = vadd.f32 -1.0, %v1717_v43 }
 0x906   :  { %v1719_v45 = vpop.eup %1718  ;;  %v1351_v46 = vsel %vm1058_vm1, %v2165_v6, -inf }
 0x907   :  { %1352 = vmax.xlane.f32.xlu1 %v1351_v46  ;;  %v2169_v49 = vsel %vm1334_vm7, %v1330_v1, %v1453_v44  ;;  %v1452_v50 = vadd.f32 -1.0, %v1719_v45 }
 0x908   :  { %v1360_v51 = vsel %vm1058_vm1, %v2169_v49, -inf }
 0x909   :  { %1361 = vmax.xlane.f32.xlu0 %v1360_v51  ;;  %v1349_v52 = vsel %vm1333_vm9, %v1329_v38, %v1452_v50 }
 0x90a   :  { %v1357_v36 = vsel %vm1058_vm1, %v1349_v52, -inf }
 0x90b   :  { %1358 = vmax.xlane.f32.xlu1 %v1357_v36 }
 0x98e   :  { %v1356_v53 = vpop.xlane.xlu0 %1355 }
 0x98f   :  { %v1364_v54 = vsub.f32 %v2161_v42, %v1356_v53 }
 0x990   :  { %v1353_v55 = vpop.xlane.xlu1 %1352 }
 0x991   :  { %v1369_v14 = vmul.f32 1.442695, %v1364_v54  ;;  %v1363_v26 = vsub.f32 %v2165_v6, %v1353_v55 }
 0x992   :  { %v1362_v56 = vpop.xlane.xlu0 %1361 }
 0x993   :  { %1720 = vpow2.f32 %v1369_v14  ;;  %v1367_v47 = vmul.f32 1.442695, %v1363_v26  ;;  %v1366_v57 = vsub.f32 %v2169_v49, %v1362_v56 }
 0x994   :  { %v1359_v58 = vpop.xlane.xlu1 %1358 }
 0x995   :  { %1722 = vpow2.f32 %v1367_v47  ;;  %v1373_v59 = vmul.f32 1.442695, %v1366_v57  ;;  %v1365_v60 = vsub.f32 %v1349_v52, %v1359_v58 }
 0x997   :  { %1724 = vpow2.f32 %v1373_v59  ;;  %v1371_v61 = vmul.f32 1.442695, %v1365_v60 }
 0x999   :  { %1726 = vpow2.f32 %v1371_v61 }
 0x9a0   :  { %v1721_v2 = vpop.eup %1720 }
 0x9a1   :  { %v1378_v33 = vsel %vm1058_vm1, %v1721_v2, 0.0 }
 0x9a2   :  { %v1723_v3 = vpop.eup %1722  ;;  %1379 = vadd.xlane.f32.xlu0 %v1378_v33 }
 0x9a3   :  { %v1375_v30 = vsel %vm1058_vm1, %v1723_v3, 0.0 }
 0x9a4   :  { %v1725_v10 = vpop.eup %1724  ;;  %1376 = vadd.xlane.f32.xlu1 %v1375_v30 }
 0x9a5   :  { %v1384_v5 = vsel %vm1058_vm1, %v1725_v10, 0.0 }
 0x9a6   :  { %v1727_v18 = vpop.eup %1726  ;;  %1385 = vadd.xlane.f32.xlu0 %v1384_v5 }
 0x9a7   :  { %v1381_v39 = vsel %vm1058_vm1, %v1727_v18, 0.0 }
 0x9a8   :  { %1382 = vadd.xlane.f32.xlu1 %v1381_v39 }
 0xa2b   :  { %v1380_v7 = vpop.xlane.xlu0 %1379 }
 0xa2c   :  { %1728 = vlog2.f32 %v1380_v7 }
 0xa2d   :  { %v1377_v4 = vpop.xlane.xlu1 %1376 }
 0xa2e   :  { %1730 = vlog2.f32 %v1377_v4 }
 0xa2f   :  { %v1386_v8 = vpop.xlane.xlu0 %1385 }
 0xa30   :  { %1732 = vlog2.f32 %v1386_v8 }
 0xa31   :  { %v1383_v11 = vpop.xlane.xlu1 %1382 }
 0xa32   :  { %1734 = vlog2.f32 %v1383_v11 }
 0xa39   :  { %v1729_v37 = vpop.eup %1728 }
 0xa3a   :  { %v1390_v15 = vmul.f32 0.6931472, %v1729_v37 }
 0xa3b   :  { %v1731_v16 = vpop.eup %1730 }
 0xa3c   :  { %v1396_v20 = vadd.f32 %v1390_v15, %v1356_v53  ;;  %v1388_v9 = vmul.f32 0.6931472, %v1731_v16 }
 0xa3d   :  { %v1733_v22 = vpop.eup %1732 }
 0xa3e   :  { %v1400_v23 = vsub.f32 %v2161_v42, %v1396_v20  ;;  %v1395_v25 = vadd.f32 %v1388_v9, %v1353_v55  ;;  %v1394_v13 = vmul.f32 0.6931472, %v1733_v22 }
 0xa3f   :  { %v1735_v19 = vpop.eup %1734 }
 0xa40   :  { %1404 = vst.msk [vmem:[%s2209_s9 + $0x8] sm:$0xff] %vm1058_vm1, %v1400_v23  ;;  %v1399_v63 = vsub.f32 %v2165_v6, %v1395_v25  ;;  %v1398_v27 = vadd.f32 %v1394_v13, %v1362_v56  ;;  %v1392_v21 = vmul.f32 0.6931472, %v1735_v19 }
 0xa42   :  { %1403 = vst.msk [vmem:[%s2209_s9] sm:$0xff] %vm1058_vm1, %v1399_v63  ;;  %v1402_v17 = vsub.f32 %v2169_v49, %v1398_v27  ;;  %v1397_v48 = vadd.f32 %v1392_v21, %v1359_v58 }
 0xa44   :  { %1406 = vst.msk [vmem:[%s2209_s9 + $0x18] sm:$0xff] %vm1058_vm1, %v1402_v17  ;;  %v1401_v28 = vsub.f32 %v1349_v52, %v1397_v48 }
 0xa46   :  { %1405 = vst.msk [vmem:[%s2209_s9 + $0x10] sm:$0xff] %vm1058_vm1, %v1401_v28 }

</bundles_post_ra>
